<compile_context>
chip_gen: v7x
topology: tpu7x:2x2x1
jax: 0.10.0
libtpu: 0.0.40
codegen_flags: <defaults>
</compile_context>

<pallas_src>
import functools

import jax
import jax.numpy as jnp
from jax.experimental import pallas as pl
from jax.experimental.pallas import tpu as pltpu


def _round_up(a, b):
    return ((a + b - 1) // b) * b


def _binarization_kernel(x_ref, o_ref, *, k, threshold):
    # Elementwise hot path: VPU mul/add + one EUP transcendental per element.
    x = x_ref[...].astype(jnp.float32)
    z = k * x - (k * threshold)          # k, threshold are Python-float immediates
    # sigmoid(z) == 0.5 * tanh(0.5 * z) + 0.5 : a single EUP op, no divide.
    o_ref[...] = (0.5 * jnp.tanh(0.5 * z) + 0.5).astype(o_ref.dtype)


def binarization_forward(x, *, threshold, k=50.0,
                         target_tile_bytes=4 << 20,
                         min_pallas_bytes=128 << 10):
    """Soft binarization: sigmoid(k * (x - threshold)). Matches Binarization.forward."""
    k = float(k)
    threshold = float(threshold)
    if not jnp.issubdtype(x.dtype, jnp.floating):
        x = x.astype(jnp.float32)

    orig_shape = x.shape
    total = int(x.size)
    itemsize = x.dtype.itemsize

    # ---- Fast path: tiny inputs (the typical (batch, num_prototypes) case). ----
    # A pallas_call here would be pure launch/DMA-setup overhead; plain jnp lets
    # XLA fuse the sigmoid into whatever produced the similarity scores.
    # TODO(synk): longer term, fuse this sigmoid as an epilogue of the kernel
    # that computes the prototype-similarity scores.
    if total == 0 or total * itemsize < min_pallas_bytes:
        return jax.nn.sigmoid(k * x - k * threshold)

    # ---- Zero-copy 2D view selection (no jnp.pad, no output slice). ----
    lane_width = None
    for lw in (2048, 1024, 512, 256, 128):
        if total % lw == 0:
            lane_width = lw
            break
    if lane_width is None:
        # Flat size not a multiple of 128: collapse leading dims and use the
        # full last dim as the lane axis. The block equals the full extent on
        # that axis so the (8,128) rule is satisfied; Pallas masks the partial
        # lanes. Still zero wrapper-side HBM traffic.
        lane_width = orig_shape[-1] if x.ndim >= 2 else total
        if 4 * 8 * lane_width * itemsize > (48 << 20):
            # Pathological super-wide last dim: even a minimal 8-row block would
            # not fit VMEM comfortably; let XLA handle this elementwise op.
            return jax.nn.sigmoid(k * x - k * threshold)

    rows = total // lane_width
    x2d = x.reshape(rows, lane_width)        # zero-cost view

    # Block rows: ~target_tile_bytes per tile, multiple of 8 sublanes, and at
    # least 2 grid steps whenever possible so the "parallel" axis can shard
    # across v7x's two TensorCores.
    bytes_per_row = lane_width * itemsize
    if rows <= 8:
        block_rows = rows                    # single block == full row extent
    else:
        block_rows = max(8, target_tile_bytes // bytes_per_row)
        block_rows = min(block_rows, _round_up(pl.cdiv(rows, 2), 8))
        block_rows = max(8, (block_rows // 8) * 8)
    grid = (pl.cdiv(rows, block_rows),)

    # VMEM limit derived from the actual footprint: double-buffered (in + out)
    # tiles plus slack — never the whole physical VMEM (v7x has 64 MiB/TC).
    tile_bytes = block_rows * lane_width * itemsize
    vmem_limit = int(min(56 << 20, max(16 << 20, 4 * tile_bytes + (8 << 20))))

    kernel = functools.partial(_binarization_kernel, k=k, threshold=threshold)

    out2d = pl.pallas_call(
        kernel,
        out_shape=jax.ShapeDtypeStruct((rows, lane_width), x.dtype),
        grid=grid,
        in_specs=[pl.BlockSpec((block_rows, lane_width), lambda i: (i, 0))],
        out_specs=pl.BlockSpec((block_rows, lane_width), lambda i: (i, 0)),
        compiler_params=pltpu.CompilerParams(
            dimension_semantics=("parallel",),
            vmem_limit_bytes=vmem_limit,
        ),
    )(x2d)

    return out2d.reshape(orig_shape)


if __name__ == "__main__":
    # Module "parameters": num_prototypes and binarize_threshold (no learned weights).
    binarize_threshold = 0.5
    kk = 50.0

    def ref(x):
        return jax.nn.sigmoid(kk * (x - binarize_threshold))

    key = jax.random.PRNGKey(0)
    k1, k2, k3 = jax.random.split(key, 3)

    # 1) Pallas-kernel path: a moderately sized batch of similarity scores.
    x_big = jax.random.uniform(k1, (128, 1024), dtype=jnp.float32)
    y_big = jax.block_until_ready(
        binarization_forward(x_big, threshold=binarize_threshold, k=kk))
    assert y_big.shape == x_big.shape and y_big.dtype == x_big.dtype
    assert jnp.allclose(y_big, ref(x_big), atol=1e-5, rtol=1e-5)

    # 2) Typical module shape (batch, num_prototypes): fast fused-jnp path ...
    x_small = jax.random.uniform(k2, (8, 128), dtype=jnp.float32)
    y_small = jax.block_until_ready(
        binarization_forward(x_small, threshold=binarize_threshold, k=kk))
    assert y_small.shape == x_small.shape and y_small.dtype == x_small.dtype
    assert jnp.allclose(y_small, ref(x_small), atol=1e-5, rtol=1e-5)
    # ... and the same shape forced through the Pallas kernel.
    y_small_k = jax.block_until_ready(
        binarization_forward(x_small, threshold=binarize_threshold, k=kk,
                             min_pallas_bytes=0))
    assert jnp.allclose(y_small_k, ref(x_small), atol=1e-5, rtol=1e-5)

    # 3) Non-128-multiple shape forced through the kernel (full-last-dim lane
    #    axis, masked stores, no pad / no slice).
    x_odd = jax.random.uniform(k3, (5, 40), dtype=jnp.float32)
    y_odd = jax.block_until_ready(
        binarization_forward(x_odd, threshold=binarize_threshold, k=kk,
                             min_pallas_bytes=0))
    assert y_odd.shape == x_odd.shape
    assert jnp.allclose(y_odd, ref(x_odd), atol=1e-5, rtol=1e-5)

    print("KERNEL_OK")
</pallas_src>

<mosaic_0001>
module attributes {stable_mosaic.version = 11 : i64} {
  func.func @_binarization_kernel(%arg0: i32, %arg1: memref<32x2048xf32, #tpu.memory_space<vmem>>, %arg2: memref<32x2048xf32, #tpu.memory_space<vmem>>) attributes {dimension_semantics = [#tpu.dimension_semantics<parallel>], iteration_bounds = array<i64: 2>, scalar_prefetch = 0 : i64, scratch_operands = 0 : i64, tpu.core_type = #tpu.core_type<tc>, window_params = [{transform_indices = @transform_0, window_bounds = array<i64: 32, 2048>}, {transform_indices = @transform_1, window_bounds = array<i64: 32, 2048>}]} {
    %c0 = arith.constant 0 : index
    %c0_0 = arith.constant 0 : index
    %0 = vector.load %arg1[%c0, %c0_0] : memref<32x2048xf32, #tpu.memory_space<vmem>>, vector<32x2048xf32>
    %cst = arith.constant 5.000000e+01 : f32
    %1 = vector.broadcast %cst : f32 to vector<32x2048xf32>
    %2 = arith.mulf %1, %0 : vector<32x2048xf32>
    %cst_1 = arith.constant 2.500000e+01 : f32
    %3 = vector.broadcast %cst_1 : f32 to vector<32x2048xf32>
    %4 = arith.subf %2, %3 : vector<32x2048xf32>
    %cst_2 = arith.constant 5.000000e-01 : f32
    %5 = vector.broadcast %cst_2 : f32 to vector<32x2048xf32>
    %6 = arith.mulf %5, %4 : vector<32x2048xf32>
    %7 = math.tanh %6 : vector<32x2048xf32>
    %cst_3 = arith.constant 5.000000e-01 : f32
    %8 = vector.broadcast %cst_3 : f32 to vector<32x2048xf32>
    %9 = arith.mulf %8, %7 : vector<32x2048xf32>
    %cst_4 = arith.constant 5.000000e-01 : f32
    %10 = vector.broadcast %cst_4 : f32 to vector<32x2048xf32>
    %11 = arith.addf %9, %10 : vector<32x2048xf32>
    %c0_5 = arith.constant 0 : index
    %c0_6 = arith.constant 0 : index
    %12 = vector.load %arg2[%c0_5, %c0_6] : memref<32x2048xf32, #tpu.memory_space<vmem>>, vector<32x2048xf32>
    tpu.vector_store %arg2[%c0_5, %c0_6], %11 {strides = array<i32>} : memref<32x2048xf32, #tpu.memory_space<vmem>>, vector<32x2048xf32>,
    return
  }
  func.func @transform_0(%arg0: i32) -> (i32, i32) {
    %c0_i32 = arith.constant 0 : i32
    %c0_i32_0 = arith.constant 0 : i32
    return %arg0, %c0_i32 : i32, i32
  }
  func.func @transform_1(%arg0: i32) -> (i32, i32) {
    %c0_i32 = arith.constant 0 : i32
    %c0_i32_0 = arith.constant 0 : i32
    return %arg0, %c0_i32 : i32, i32
  }
}

</mosaic_0001>

<bundles_post_ra>
// kernel: tpu_custom_call.1
= control target key start
LH: loop header
LB: loop body
LE: loop exit
PB: predicated region body
PF: predicated region fallthrough
CT: control target
= control target key end

     0   :  { %6 = vsyncpa [#allocation3], 0  ;;  %s1413_s0 = inlined_call_operand.hbm [shape: f32[64,2048], index: 0, kind: input, shape index: {}]   ;;  %s1414_s1 = inlined_call_operand.hbm [shape: f32[64,2048], index: 1, kind: output, shape index: {}]  }
   0x1   :  { %8 = vsyncpa [#allocation3 + $0x1], 0 }
   0x2   :  { %9 = vsyncpa [#allocation4], 0 }
   0x3   :  { %11 = vsyncpa [#allocation4 + $0x1], 0  ;;  %s1114_s6 = smov 0   ;;  %s1116_s7 = smov 0  }
   0x4   :  { %s1118_s8 = smov 0   ;;  %s1120_s9 = smov 0  }
   0x5 LB: > { %s1135_s10 = sadd.s32 4294967295, %s1096_s9   ;;  %s738_s11 = sadd.s32 4294967294, %s1096_s9   ;;  %s1096_s9 = sphi %s1120_s9, %s1427_s9   ;;  %s1092_s8 = sphi %s1118_s8, %s1426_s8   ;;  %s1088_s7 = sphi %s1116_s7, %s1425_s7   ;;  %s1084_s6 = sphi %s1114_s6, %s1424_s6  }
   0x6   : > { %s1139_s12 = sadd.s32 1, %s1096_s9   ;;  %s24_s13 = sadd.s32 1, %s1092_s8 }
   0x7   : > { %s21_s14 = ssub.s32 %s1096_s9, %s1139_s12  ;;  %p31_p0 = scmp.ne.s32.totalorder %s1092_s8, %s1088_s7 }
   0x8   : > { %p22_p1 = scmp.eq.s32.totalorder %s21_s14, 0  ;;  %p32_p2 = scmp.eq.s32.totalorder %s1096_s9, 0 }
   0x9   : > { %p37_p3 = scmp.ne.s32.totalorder %s1088_s7, %s1084_s6  ;;  %p38_p4 = scmp.eq.s32.totalorder %s1135_s10, 0 }
   0xa   : > { %s1151_s15 = scalar_select %p22_p1, %s1092_s8, %s24_s13  }
   0xb   : > { %p1153_p5 = por %p32_p2, %p31_p0  ;;  %p1157_p6 = por %p38_p4, %p37_p3 }
   0xc   : > { %p61_p7 = scmp.eq.s32.totalorder %s1135_s10, 1  ;;  %p67_p8 = scmp.eq.s32.totalorder %s738_s11, 1 }
   0xd   : > { %p834_p10 = scmp.lt.s32.totalorder %s1096_s9, 2  ;;  %s87_s20 = sand.u32 1, %s1092_s8  }
   0xe   : > { %p1164_p11 = por %p61_p7, %p31_p0  ;;  %p1168_p12 = por %p67_p8, %p37_p3 }
   0xf   : > { %s819_s21 = sshll.u32 %s1096_s9, 13  ;;  %s741_s22 = sshll.u32 %s87_s20, 9 }
  0x10   : > { %s1418_s18 = scalar_select %p1164_p11, 1, 0 }
  0x11   : > { %s1419_s19 = scalar_select %p1168_p12, 1, 0 }
  0x12   : > { %s1177_s25 = scalar_lea.hbm %s1413_s0, %s819_s21  ;;  %s91_s26 = scalar_lea.vmem [#allocation2], %s741_s22 }
  0x13   : > { %s99_s27 = sshll.u32 %s91_s26, 4  ;;  %p1181_p13 = pnand %p834_p10, %p1153_p5  ;;  %s1185_s27 = int_to_ptr.vmem [resolvable:$true] %s99_s27 }
  0x14   : > { %s1187_s29 = scalar_lea.sflag [#allocation3], %s87_s20  ;;  %s1000_s30 = scalar_lea.hbm %s1177_s25, 8192 }
  0x15   : > { %p1001_p0 = scmp.ne.s32.totalorder %s1177_s25, %s1000_s30  ;;  %p1002_p1 = pneg %p1181_p13 }
  0x16   : > { %s1005_s4 = scalar_lea.hbm %s1413_s0, 16384  ;;  %p1006_p4 = scmp.lt.u32.totalorder %s1177_s25, %s1413_s0 }
  0x17   : > { %p1003_p2 = pnand %p1002_p1, %p1001_p0  ;;  %p1007_p5 = scmp.lt.u32.totalorder %s1005_s4, %s1000_s30 }
  0x18   : > { %p1009_p8 = scmp.lt.u32.totalorder %s1000_s30, %s1177_s25 }
  0x19   : > { %p1004_p3 = pneg %p1003_p2  ;;  %p1008_p7 = por %p1007_p5, %p1006_p4 }
  0x1b   : > { %p1010_p10 = por %p1009_p8, %p1008_p7 }
  0x1d   : > { %p1011_p9 = pnand %p1010_p10, %p1004_p3 }
  0x1f   : > { %1014 = shalt.err (!%p1011_p9)
}
  0x20   : > { %s1015_s13 = scalar_lea.vmem %s1185_s27, 8192  ;;  %s1098_s14 = smov [#allocation2]  }
  0x21   : > { %p1016_p0 = scmp.ne.s32.totalorder %s1185_s27, %s1015_s13  ;;  %s1020_s16 = sshll.u32 %s1098_s14, 4  ;;  %s1021_s16 = int_to_ptr.vmem [resolvable:$false] %s1020_s16 }
  0x22   : > { %s1022_s20 = scalar_lea.vmem %s1021_s16, 16384  ;;  %p1023_p11 = scmp.lt.s32.totalorder %s1185_s27, %s1021_s16 }
  0x23   : > { %p1018_p2 = pnand %p1016_p0, %p1002_p1  ;;  %p1024_p4 = scmp.lt.s32.totalorder %s1022_s20, %s1015_s13 }
  0x25   : > { %p1019_p12 = pneg %p1018_p2  ;;  %p1025_p5 = por %p1024_p4, %p1023_p11 }
  0x27   : > { %p1026_p7 = pnand %p1025_p5, %p1019_p12 }
  0x29   : > { %1029 = shalt.err (!%p1026_p7)
}
  0x2a   : > { %s1099_s21 = smov 2048   ;;  %s1100_s22 = smov 128  }
  0x2b   : > { %829 = dma.hbm_to_vmem [thread:$0]  (!%p1181_p13), %s1177_s25, 8192, %s1185_s27, %s1187_s29, %s1099_s21, %s1099_s21, %s1100_s22  }
  0x2c   : > { %p745_p9 = scmp.ge.s32.totalorder %s1096_s9, 1  ;;  %p107_p1 = scmp.lt.s32.totalorder %s1096_s9, 3 }
  0x2e   : > { %p108_p3 = pnand %p745_p9, %p107_p1 }
  0x2f   : > { %s1218_s23 = sand.u32 (!%p108_p3), 1, %s1088_s7  }
  0x30   : > { %111 = sbr.rel (%p108_p3) target bundleno = 180 (0xb4), region = 24  ;;  %s746_s24 = sshll.u32 (!%p108_p3), %s1218_s23, 9 }
  0x31   : > { %s114_s26 = scalar_lea.sflag (!%p108_p3), [#allocation3], %s1218_s23  ;;  %s1224_s30 = scalar_lea.vmem (!%p108_p3), [#allocation2], %s746_s24 }
  0x37   : > { %1075 = dma.done.wait (%p1157_p6), %s114_s26, 8192  }
  0x38   : > { %1077 = vsyncadd (%p1157_p6), %s114_s26, 4294959104  ;;  %v138_v0 = vld [vmem:[%s1224_s30] sm:$0xff]  ;;  %v139_v1 = vld [vmem:[%s1224_s30 + $0x8] sm:$0xff]  ;;  %s1254_s17 = scalar_lea.vmem [#allocation5], %s746_s24  ;;  %s821_s25 = sshll.u32 %s1135_s10, 13 }
  0x39   : > { %v140_v2 = vld [vmem:[%s1224_s30 + $0x10] sm:$0xff]  ;;  %v202_v3 = vmul.f32 50.0, %v138_v0  ;;  %v203_v4 = vmul.f32 50.0, %v139_v1  ;;  %v141_v6 = vld [vmem:[%s1224_s30 + $0x18] sm:$0xff]  ;;  %v142_v7 = vld [vmem:[%s1224_s30 + $0x20] sm:$0xff]  ;;  %s665_s27 = sshll.u32 %s1254_s17, 4  ;;  %s1364_s2 = scalar_lea.hbm %s1414_s1, %s821_s25  ;;  %s1366_s27 = int_to_ptr.vmem [resolvable:$true] %s665_s27 }
  0x3a   : > { %v204_v5 = vmul.f32 50.0, %v140_v2  ;;  %v143_v8 = vld [vmem:[%s1224_s30 + $0x28] sm:$0xff]  ;;  %v205_v9 = vmul.f32 50.0, %v141_v6  ;;  %v206_v10 = vmul.f32 50.0, %v142_v7  ;;  %v144_v12 = vld [vmem:[%s1224_s30 + $0x30] sm:$0xff]  ;;  %v145_v13 = vld [vmem:[%s1224_s30 + $0x38] sm:$0xff] }
  0x3b   : > { %v207_v11 = vmul.f32 50.0, %v143_v8  ;;  %v748_v14 = vadd.f32 -25.0, %v202_v3  ;;  %v749_v15 = vadd.f32 -25.0, %v203_v4  ;;  %v208_v17 = vmul.f32 50.0, %v144_v12  ;;  %v146_v22 = vld [vmem:[%s1224_s30 + $0x40] sm:$0xff]  ;;  %v147_v23 = vld [vmem:[%s1224_s30 + $0x48] sm:$0xff] }
  0x3c   : > { %v750_v16 = vadd.f32 -25.0, %v204_v5  ;;  %v751_v18 = vadd.f32 -25.0, %v205_v9  ;;  %v752_v19 = vadd.f32 -25.0, %v206_v10  ;;  %v209_v21 = vmul.f32 50.0, %v145_v13  ;;  %v148_v28 = vld [vmem:[%s1224_s30 + $0x50] sm:$0xff]  ;;  %v149_v29 = vld [vmem:[%s1224_s30 + $0x58] sm:$0xff] }
  0x3d   : > { %v753_v20 = vadd.f32 -25.0, %v207_v11  ;;  %v330_v24 = vmul.f32 0.5, %v748_v14  ;;  %v331_v25 = vmul.f32 0.5, %v749_v15  ;;  %v754_v27 = vadd.f32 -25.0, %v208_v17  ;;  %v150_v34 = vld [vmem:[%s1224_s30 + $0x60] sm:$0xff]  ;;  %v151_v38 = vld [vmem:[%s1224_s30 + $0x68] sm:$0xff] }
  0x3e   : > { %v332_v26 = vmul.f32 0.5, %v750_v16  ;;  %v333_v30 = vmul.f32 0.5, %v751_v18  ;;  %v334_v31 = vmul.f32 0.5, %v752_v19  ;;  %v755_v33 = vadd.f32 -25.0, %v209_v21  ;;  %v152_v48 = vld [vmem:[%s1224_s30 + $0x70] sm:$0xff]  ;;  %v153_v49 = vld [vmem:[%s1224_s30 + $0x78] sm:$0xff] }
  0x3f   : > { %v335_v32 = vmul.f32 0.5, %v753_v20  ;;  %872 = vtanh.f32 %v330_v24  ;;  %v336_v35 = vmul.f32 0.5, %v754_v27  ;;  %v210_v36 = vmul.f32 50.0, %v146_v22  ;;  %v154_v53 = vld [vmem:[%s1224_s30 + $0x80] sm:$0xff]  ;;  %v155_v54 = vld [vmem:[%s1224_s30 + $0x88] sm:$0xff]  ;;  %v156_v58 = vld [vmem:[%s1224_s30 + $0x90] sm:$0xff] }
  0x40   : > { %v211_v37 = vmul.f32 50.0, %v147_v23  ;;  %874 = vtanh.f32 %v331_v25  ;;  %v337_v39 = vmul.f32 0.5, %v755_v33  ;;  %v212_v40 = vmul.f32 50.0, %v148_v28  ;;  %v157_v62 = vld [vmem:[%s1224_s30 + $0x98] sm:$0xff]  ;;  %v158_v12 = vld [vmem:[%s1224_s30 + $0xa0] sm:$0xff]  ;;  %v159_v25 = vld [vmem:[%s1224_s30 + $0xa8] sm:$0xff] }
  0x41   : > { %v213_v41 = vmul.f32 50.0, %v149_v29  ;;  %876 = vtanh.f32 %v332_v26  ;;  %v756_v42 = vadd.f32 -25.0, %v210_v36  ;;  %v214_v44 = vmul.f32 50.0, %v150_v34  ;;  %s651_s10 = scalar_lea.sflag [#allocation4], %s1218_s23  ;;  %s1030_s3 = scalar_lea.vmem %s1366_s27, 8192 }
  0x42   : > { %v757_v43 = vadd.f32 -25.0, %v211_v37  ;;  %878 = vtanh.f32 %v333_v30  ;;  %v758_v45 = vadd.f32 -25.0, %v212_v40  ;;  %v215_v47 = vmul.f32 50.0, %v151_v38  ;;  %v160_v38 = vld [vmem:[%s1224_s30 + $0xb0] sm:$0xff]  ;;  %p1031_p6 = scmp.ne.s32.totalorder %s1366_s27, %s1030_s3  ;;  %p1421_p11 = scmp.ne.s32.totalorder %s1418_s18, 0 }
  0x43   : > { %v759_v46 = vadd.f32 -25.0, %v213_v41  ;;  %880 = vtanh.f32 %v334_v31  ;;  %v338_v50 = vmul.f32 0.5, %v756_v42  ;;  %v760_v52 = vadd.f32 -25.0, %v214_v44  ;;  %s1101_s4 = smov [#allocation5]  }
  0x44   : > { %v339_v51 = vmul.f32 0.5, %v757_v43  ;;  %882 = vtanh.f32 %v335_v32  ;;  %v340_v55 = vmul.f32 0.5, %v758_v45  ;;  %v761_v57 = vadd.f32 -25.0, %v215_v47  ;;  %v161_v47 = vld [vmem:[%s1224_s30 + $0xb8] sm:$0xff]  ;;  %p1032_p12 = pnand %p1031_p6, %p1421_p11  ;;  %s1034_s5 = sshll.u32 %s1101_s4, 4  ;;  %s1035_s5 = int_to_ptr.vmem [resolvable:$false] %s1034_s5 }
  0x45   : > { %v341_v56 = vmul.f32 0.5, %v759_v46  ;;  %884 = vtanh.f32 %v336_v35  ;;  %v342_v59 = vmul.f32 0.5, %v760_v52  ;;  %v216_v60 = vmul.f32 50.0, %v152_v48  ;;  %v162_v52 = vld [vmem:[%s1224_s30 + $0xc0] sm:$0xff]  ;;  %s1036_s11 = scalar_lea.vmem %s1035_s5, 16384  ;;  %p1037_p8 = scmp.lt.s32.totalorder %s1366_s27, %s1035_s5 }
  0x46   : > { %v217_v61 = vmul.f32 50.0, %v153_v49  ;;  %886 = vtanh.f32 %v337_v39  ;;  %v343_v63 = vmul.f32 0.5, %v761_v57  ;;  %v218_v0 = vmul.f32 50.0, %v154_v53  ;;  %p1033_p13 = pneg %p1032_p12  ;;  %p1038_p10 = scmp.lt.s32.totalorder %s1036_s11, %s1030_s3 }
  0x47   : > { %v219_v1 = vmul.f32 50.0, %v155_v54  ;;  %888 = vtanh.f32 %v338_v50  ;;  %v762_v2 = vadd.f32 -25.0, %v216_v60  ;;  %v220_v4 = vmul.f32 50.0, %v156_v58 }
  0x48   : > { %v763_v3 = vadd.f32 -25.0, %v217_v61  ;;  %890 = vtanh.f32 %v339_v51  ;;  %v764_v5 = vadd.f32 -25.0, %v218_v0  ;;  %v221_v7 = vmul.f32 50.0, %v157_v62  ;;  %v163_v62 = vld [vmem:[%s1224_s30 + $0xc8] sm:$0xff]  ;;  %p1039_p0 = por %p1038_p10, %p1037_p8 }
  0x49   : > { %v765_v6 = vadd.f32 -25.0, %v219_v1  ;;  %v873_v8 = vpop.eup %872  ;;  %892 = vtanh.f32 %v340_v55  ;;  %v344_v9 = vmul.f32 0.5, %v762_v2  ;;  %v766_v11 = vadd.f32 -25.0, %v220_v4 }
  0x4a   : > { %v345_v10 = vmul.f32 0.5, %v763_v3  ;;  %v875_v13 = vpop.eup %874  ;;  %v458_v14 = vmul.f32 0.5, %v873_v8  ;;  %894 = vtanh.f32 %v341_v56  ;;  %v346_v15 = vmul.f32 0.5, %v764_v5  ;;  %p1040_p2 = pnand %p1039_p0, %p1033_p13 }
  0x4b   : > { %v347_v16 = vmul.f32 0.5, %v765_v6  ;;  %v877_v17 = vpop.eup %876  ;;  %v459_v18 = vmul.f32 0.5, %v875_v13  ;;  %896 = vtanh.f32 %v342_v59  ;;  %v348_v19 = vmul.f32 0.5, %v766_v11  ;;  %v164_v13 = vld [vmem:[%s1224_s30 + $0xd0] sm:$0xff] }
  0x4c   : > { %v767_v20 = vadd.f32 -25.0, %v221_v7  ;;  %v879_v21 = vpop.eup %878  ;;  %v522_v22 = vadd.f32 0.5, %v458_v14  ;;  %v460_v23 = vmul.f32 0.5, %v877_v17  ;;  %898 = vtanh.f32 %v343_v63 }
  0x4d   : > { %v222_v24 = vmul.f32 50.0, %v158_v12  ;;  %v881_v26 = vpop.eup %880  ;;  %v523_v27 = vadd.f32 0.5, %v459_v18  ;;  %v461_v28 = vmul.f32 0.5, %v879_v21  ;;  %900 = vtanh.f32 %v344_v9 }
  0x4e   : > { %v349_v29 = vmul.f32 0.5, %v767_v20  ;;  %v883_v30 = vpop.eup %882  ;;  %586 = vst [vmem:[%s1254_s17] sm:$0xff] %v522_v22  ;;  %v524_v31 = vadd.f32 0.5, %v460_v23  ;;  %v462_v32 = vmul.f32 0.5, %v881_v26  ;;  %902 = vtanh.f32 %v345_v10  ;;  %v165_v23 = vld [vmem:[%s1224_s30 + $0xd8] sm:$0xff] }
  0x4f   : > { %v768_v33 = vadd.f32 -25.0, %v222_v24  ;;  %v885_v34 = vpop.eup %884  ;;  %587 = vst [vmem:[%s1254_s17 + $0x8] sm:$0xff] %v523_v27  ;;  %v525_v35 = vadd.f32 0.5, %v461_v28  ;;  %v463_v36 = vmul.f32 0.5, %v883_v30  ;;  %904 = vtanh.f32 %v346_v15  ;;  %v166_v28 = vld [vmem:[%s1224_s30 + $0xe0] sm:$0xff] }
  0x50   : > { %v223_v37 = vmul.f32 50.0, %v159_v25  ;;  %v887_v39 = vpop.eup %886  ;;  %588 = vst [vmem:[%s1254_s17 + $0x10] sm:$0xff] %v524_v31  ;;  %v526_v40 = vadd.f32 0.5, %v462_v32  ;;  %v464_v41 = vmul.f32 0.5, %v885_v34  ;;  %906 = vtanh.f32 %v347_v16 }
  0x51   : > { %v350_v42 = vmul.f32 0.5, %v768_v33  ;;  %v889_v43 = vpop.eup %888  ;;  %589 = vst [vmem:[%s1254_s17 + $0x18] sm:$0xff] %v525_v35  ;;  %v527_v44 = vadd.f32 0.5, %v463_v36  ;;  %v465_v45 = vmul.f32 0.5, %v887_v39  ;;  %908 = vtanh.f32 %v348_v19  ;;  %v168_v39 = vld [vmem:[%s1224_s30 + $0xf0] sm:$0xff] }
  0x52   : > { %v769_v46 = vadd.f32 -25.0, %v223_v37  ;;  %v891_v48 = vpop.eup %890  ;;  %590 = vst [vmem:[%s1254_s17 + $0x20] sm:$0xff] %v526_v40  ;;  %v528_v49 = vadd.f32 0.5, %v464_v41  ;;  %v466_v50 = vmul.f32 0.5, %v889_v43  ;;  %910 = vtanh.f32 %v349_v29 }
  0x53   : > { %v224_v51 = vmul.f32 50.0, %v160_v38  ;;  %v893_v53 = vpop.eup %892  ;;  %591 = vst [vmem:[%s1254_s17 + $0x28] sm:$0xff] %v527_v44  ;;  %v529_v54 = vadd.f32 0.5, %v465_v45  ;;  %v467_v55 = vmul.f32 0.5, %v891_v48  ;;  %912 = vtanh.f32 %v350_v42  ;;  %v167_v38 = vld [vmem:[%s1224_s30 + $0xe8] sm:$0xff]  ;;  %v169_v48 = vld [vmem:[%s1224_s30 + $0xf8] sm:$0xff] }
  0x54   : > { %v351_v56 = vmul.f32 0.5, %v769_v46  ;;  %v895_v57 = vpop.eup %894  ;;  %592 = vst [vmem:[%s1254_s17 + $0x30] sm:$0xff] %v528_v49  ;;  %v530_v58 = vadd.f32 0.5, %v466_v50  ;;  %v468_v59 = vmul.f32 0.5, %v893_v53  ;;  %v225_v61 = vmul.f32 50.0, %v161_v47 }
  0x55   : > { %v770_v60 = vadd.f32 -25.0, %v224_v51  ;;  %v897_v63 = vpop.eup %896  ;;  %593 = vst [vmem:[%s1254_s17 + $0x38] sm:$0xff] %v529_v54  ;;  %v531_v0 = vadd.f32 0.5, %v467_v55  ;;  %v469_v1 = vmul.f32 0.5, %v895_v57  ;;  %v226_v2 = vmul.f32 50.0, %v162_v52  ;;  %v170_v54 = vld [vmem:[%s1224_s30 + $0x100] sm:$0xff] }
  0x56   : > { %914 = vtanh.f32 %v351_v56  ;;  %v899_v3 = vpop.eup %898  ;;  %594 = vst [vmem:[%s1254_s17 + $0x40] sm:$0xff] %v530_v58  ;;  %v532_v4 = vadd.f32 0.5, %v468_v59  ;;  %v470_v5 = vmul.f32 0.5, %v897_v63  ;;  %v771_v7 = vadd.f32 -25.0, %v225_v61  ;;  %v171_v55 = vld [vmem:[%s1224_s30 + $0x108] sm:$0xff]  ;;  %v172_v63 = vld [vmem:[%s1224_s30 + $0x110] sm:$0xff] }
  0x57   : > { %v352_v6 = vmul.f32 0.5, %v770_v60  ;;  %v901_v8 = vpop.eup %900  ;;  %595 = vst [vmem:[%s1254_s17 + $0x48] sm:$0xff] %v531_v0  ;;  %v533_v9 = vadd.f32 0.5, %v469_v1  ;;  %v471_v10 = vmul.f32 0.5, %v899_v3  ;;  %v772_v11 = vadd.f32 -25.0, %v226_v2 }
  0x58   : > { %v227_v12 = vmul.f32 50.0, %v163_v62  ;;  %v903_v14 = vpop.eup %902  ;;  %596 = vst [vmem:[%s1254_s17 + $0x50] sm:$0xff] %v532_v4  ;;  %v534_v15 = vadd.f32 0.5, %v470_v5  ;;  %v472_v16 = vmul.f32 0.5, %v901_v8  ;;  %v353_v17 = vmul.f32 0.5, %v771_v7  ;;  %v173_v4 = vld [vmem:[%s1224_s30 + $0x118] sm:$0xff] }
  0x59   : > { %916 = vtanh.f32 %v352_v6  ;;  %v905_v18 = vpop.eup %904  ;;  %597 = vst [vmem:[%s1254_s17 + $0x58] sm:$0xff] %v533_v9  ;;  %v535_v19 = vadd.f32 0.5, %v471_v10  ;;  %v473_v20 = vmul.f32 0.5, %v903_v14  ;;  %v354_v21 = vmul.f32 0.5, %v772_v11 }
  0x5a   : > { %v773_v22 = vadd.f32 -25.0, %v227_v12  ;;  %v907_v24 = vpop.eup %906  ;;  %598 = vst [vmem:[%s1254_s17 + $0x60] sm:$0xff] %v534_v15  ;;  %v536_v25 = vadd.f32 0.5, %v472_v16  ;;  %v474_v26 = vmul.f32 0.5, %v905_v18  ;;  %918 = vtanh.f32 %v353_v17  ;;  %v174_v17 = vld [vmem:[%s1224_s30 + $0x120] sm:$0xff] }
  0x5b   : > { %v228_v27 = vmul.f32 50.0, %v164_v13  ;;  %v909_v29 = vpop.eup %908  ;;  %599 = vst [vmem:[%s1254_s17 + $0x68] sm:$0xff] %v535_v19  ;;  %v537_v30 = vadd.f32 0.5, %v473_v20  ;;  %v475_v31 = vmul.f32 0.5, %v907_v24  ;;  %920 = vtanh.f32 %v354_v21  ;;  %v175_v21 = vld [vmem:[%s1224_s30 + $0x128] sm:$0xff] }
  0x5c   : > { %v355_v32 = vmul.f32 0.5, %v773_v22  ;;  %v911_v33 = vpop.eup %910  ;;  %600 = vst [vmem:[%s1254_s17 + $0x70] sm:$0xff] %v536_v25  ;;  %v538_v34 = vadd.f32 0.5, %v474_v26  ;;  %v476_v35 = vmul.f32 0.5, %v909_v29  ;;  %v229_v37 = vmul.f32 50.0, %v165_v23 }
  0x5d   : > { %v774_v36 = vadd.f32 -25.0, %v228_v27  ;;  %v913_v40 = vpop.eup %912  ;;  %601 = vst [vmem:[%s1254_s17 + $0x78] sm:$0xff] %v537_v30  ;;  %v539_v41 = vadd.f32 0.5, %v475_v31  ;;  %v477_v42 = vmul.f32 0.5, %v911_v33  ;;  %v230_v43 = vmul.f32 50.0, %v166_v28  ;;  %v176_v27 = vld [vmem:[%s1224_s30 + $0x130] sm:$0xff] }
  0x5e   : > { %922 = vtanh.f32 %v355_v32  ;;  %602 = vst [vmem:[%s1254_s17 + $0x80] sm:$0xff] %v538_v34  ;;  %v540_v44 = vadd.f32 0.5, %v476_v35  ;;  %v478_v45 = vmul.f32 0.5, %v913_v40  ;;  %v775_v47 = vadd.f32 -25.0, %v229_v37  ;;  %v177_v31 = vld [vmem:[%s1224_s30 + $0x138] sm:$0xff]  ;;  %v178_v35 = vld [vmem:[%s1224_s30 + $0x140] sm:$0xff] }
  0x5f   : > { %v356_v46 = vmul.f32 0.5, %v774_v36  ;;  %603 = vst [vmem:[%s1254_s17 + $0x88] sm:$0xff] %v539_v41  ;;  %v541_v50 = vadd.f32 0.5, %v477_v42  ;;  %v776_v51 = vadd.f32 -25.0, %v230_v43  ;;  %v231_v52 = vmul.f32 50.0, %v167_v38 }
  0x60   : > { %v915_v49 = vpop.eup %914  ;;  %v232_v53 = vmul.f32 50.0, %v168_v39  ;;  %604 = vst [vmem:[%s1254_s17 + $0x90] sm:$0xff] %v540_v44  ;;  %v542_v56 = vadd.f32 0.5, %v478_v45  ;;  %v357_v58 = vmul.f32 0.5, %v775_v47  ;;  %v233_v62 = vmul.f32 50.0, %v169_v48  ;;  %v179_v47 = vld [vmem:[%s1224_s30 + $0x148] sm:$0xff] }
  0x61   : > { %v479_v57 = vmul.f32 0.5, %v915_v49  ;;  %924 = vtanh.f32 %v356_v46  ;;  %605 = vst [vmem:[%s1254_s17 + $0x98] sm:$0xff] %v541_v50  ;;  %v358_v59 = vmul.f32 0.5, %v776_v51  ;;  %v777_v60 = vadd.f32 -25.0, %v231_v52 }
  0x62   : > { %v778_v61 = vadd.f32 -25.0, %v232_v53  ;;  %606 = vst [vmem:[%s1254_s17 + $0xa0] sm:$0xff] %v542_v56  ;;  %926 = vtanh.f32 %v357_v58  ;;  %v234_v2 = vmul.f32 50.0, %v170_v54  ;;  %v235_v3 = vmul.f32 50.0, %v171_v55  ;;  %v180_v56 = vld [vmem:[%s1224_s30 + $0x150] sm:$0xff] }
  0x63   : > { %v917_v0 = vpop.eup %916  ;;  %v543_v1 = vadd.f32 0.5, %v479_v57  ;;  %928 = vtanh.f32 %v358_v59  ;;  %v359_v6 = vmul.f32 0.5, %v777_v60  ;;  %v779_v9 = vadd.f32 -25.0, %v233_v62  ;;  %v182_v62 = vld [vmem:[%s1224_s30 + $0x160] sm:$0xff] }
  0x64   : > { %v480_v5 = vmul.f32 0.5, %v917_v0  ;;  %v360_v7 = vmul.f32 0.5, %v778_v61  ;;  %v919_v8 = vpop.eup %918  ;;  %v780_v10 = vadd.f32 -25.0, %v234_v2  ;;  %v781_v11 = vadd.f32 -25.0, %v235_v3  ;;  %v181_v61 = vld [vmem:[%s1224_s30 + $0x158] sm:$0xff] }
  0x65   : > { %607 = vst [vmem:[%s1254_s17 + $0xa8] sm:$0xff] %v543_v1  ;;  %v236_v12 = vmul.f32 50.0, %v172_v63  ;;  %v921_v13 = vpop.eup %920  ;;  %v481_v15 = vmul.f32 0.5, %v919_v8  ;;  %930 = vtanh.f32 %v359_v6  ;;  %v237_v16 = vmul.f32 50.0, %v173_v4  ;;  %v183_v6 = vld [vmem:[%s1224_s30 + $0x168] sm:$0xff] }
  0x66   : > { %v544_v14 = vadd.f32 0.5, %v480_v5  ;;  %v482_v18 = vmul.f32 0.5, %v921_v13  ;;  %932 = vtanh.f32 %v360_v7  ;;  %v361_v19 = vmul.f32 0.5, %v779_v9 }
  0x67   : > { %v362_v20 = vmul.f32 0.5, %v780_v10  ;;  %v545_v23 = vadd.f32 0.5, %v481_v15  ;;  %v363_v24 = vmul.f32 0.5, %v781_v11  ;;  %v782_v25 = vadd.f32 -25.0, %v236_v12 }
  0x68   : > { %v923_v22 = vpop.eup %922  ;;  %608 = vst [vmem:[%s1254_s17 + $0xb0] sm:$0xff] %v544_v14  ;;  %v783_v26 = vadd.f32 -25.0, %v237_v16  ;;  %v546_v28 = vadd.f32 0.5, %v482_v18  ;;  %934 = vtanh.f32 %v361_v19  ;;  %v238_v30 = vmul.f32 50.0, %v174_v17 }
  0x69   : > { %v483_v29 = vmul.f32 0.5, %v923_v22  ;;  %609 = vst [vmem:[%s1254_s17 + $0xb8] sm:$0xff] %v545_v23  ;;  %936 = vtanh.f32 %v362_v20  ;;  %v364_v32 = vmul.f32 0.5, %v782_v25  ;;  %v239_v34 = vmul.f32 50.0, %v175_v21  ;;  %v184_v25 = vld [vmem:[%s1224_s30 + $0x170] sm:$0xff] }
  0x6a   : > { %v365_v33 = vmul.f32 0.5, %v783_v26  ;;  %610 = vst [vmem:[%s1254_s17 + $0xc0] sm:$0xff] %v546_v28  ;;  %938 = vtanh.f32 %v363_v24  ;;  %v784_v38 = vadd.f32 -25.0, %v238_v30  ;;  %v240_v39 = vmul.f32 50.0, %v176_v27  ;;  %v185_v26 = vld [vmem:[%s1224_s30 + $0x178] sm:$0xff] }
  0x6b   : > { %v925_v36 = vpop.eup %924  ;;  %v547_v37 = vadd.f32 0.5, %v483_v29  ;;  %940 = vtanh.f32 %v364_v32  ;;  %v785_v41 = vadd.f32 -25.0, %v239_v34  ;;  %v241_v42 = vmul.f32 50.0, %v177_v31 }
  0x6c   : > { %v484_v40 = vmul.f32 0.5, %v925_v36  ;;  %v927_v43 = vpop.eup %926  ;;  %942 = vtanh.f32 %v365_v33  ;;  %v366_v44 = vmul.f32 0.5, %v784_v38  ;;  %v786_v45 = vadd.f32 -25.0, %v240_v39 }
  0x6d   : > { %611 = vst [vmem:[%s1254_s17 + $0xc8] sm:$0xff] %v547_v37  ;;  %v242_v46 = vmul.f32 50.0, %v178_v35  ;;  %v929_v48 = vpop.eup %928  ;;  %v485_v50 = vmul.f32 0.5, %v927_v43  ;;  %v367_v51 = vmul.f32 0.5, %v785_v41  ;;  %v787_v52 = vadd.f32 -25.0, %v241_v42  ;;  %v186_v35 = vld [vmem:[%s1224_s30 + $0x180] sm:$0xff] }
  0x6e   : > { %v548_v49 = vadd.f32 0.5, %v484_v40  ;;  %v486_v53 = vmul.f32 0.5, %v929_v48  ;;  %944 = vtanh.f32 %v366_v44  ;;  %v368_v54 = vmul.f32 0.5, %v786_v45  ;;  %v187_v40 = vld [vmem:[%s1224_s30 + $0x188] sm:$0xff] }
  0x6f   : > { %v788_v55 = vadd.f32 -25.0, %v242_v46  ;;  %v931_v57 = vpop.eup %930  ;;  %v549_v58 = vadd.f32 0.5, %v485_v50  ;;  %946 = vtanh.f32 %v367_v51  ;;  %v369_v59 = vmul.f32 0.5, %v787_v52 }
  0x70   : > { %612 = vst [vmem:[%s1254_s17 + $0xd0] sm:$0xff] %v548_v49  ;;  %v243_v60 = vmul.f32 50.0, %v179_v47  ;;  %v933_v63 = vpop.eup %932  ;;  %v550_v0 = vadd.f32 0.5, %v486_v53  ;;  %v487_v1 = vmul.f32 0.5, %v931_v57  ;;  %948 = vtanh.f32 %v368_v54  ;;  %v188_v54 = vld [vmem:[%s1224_s30 + $0x190] sm:$0xff] }
  0x71   : > { %v370_v2 = vmul.f32 0.5, %v788_v55  ;;  %613 = vst [vmem:[%s1254_s17 + $0xd8] sm:$0xff] %v549_v58  ;;  %v488_v3 = vmul.f32 0.5, %v933_v63  ;;  %950 = vtanh.f32 %v369_v59  ;;  %v244_v5 = vmul.f32 50.0, %v180_v56  ;;  %v189_v55 = vld [vmem:[%s1224_s30 + $0x198] sm:$0xff] }
  0x72   : > { %v789_v4 = vadd.f32 -25.0, %v243_v60  ;;  %v935_v7 = vpop.eup %934  ;;  %614 = vst [vmem:[%s1254_s17 + $0xe0] sm:$0xff] %v550_v0  ;;  %v551_v8 = vadd.f32 0.5, %v487_v1  ;;  %v245_v9 = vmul.f32 50.0, %v181_v61  ;;  %v246_v10 = vmul.f32 50.0, %v182_v62  ;;  %v190_v1 = vld [vmem:[%s1224_s30 + $0x1a0] sm:$0xff] }
  0x73   : > { %952 = vtanh.f32 %v370_v2  ;;  %v937_v11 = vpop.eup %936  ;;  %v552_v12 = vadd.f32 0.5, %v488_v3  ;;  %v489_v13 = vmul.f32 0.5, %v935_v7  ;;  %v790_v15 = vadd.f32 -25.0, %v244_v5  ;;  %v191_v5 = vld [vmem:[%s1224_s30 + $0x1a8] sm:$0xff]  ;;  %v193_v7 = vld [vmem:[%s1224_s30 + $0x1b8] sm:$0xff] }
  0x74   : > { %v371_v14 = vmul.f32 0.5, %v789_v4  ;;  %v939_v16 = vpop.eup %938  ;;  %615 = vst [vmem:[%s1254_s17 + $0xe8] sm:$0xff] %v551_v8  ;;  %v490_v17 = vmul.f32 0.5, %v937_v11  ;;  %v791_v18 = vadd.f32 -25.0, %v245_v9  ;;  %v792_v19 = vadd.f32 -25.0, %v246_v10 }
  0x75   : > { %v247_v20 = vmul.f32 50.0, %v183_v6  ;;  %v941_v21 = vpop.eup %940  ;;  %616 = vst [vmem:[%s1254_s17 + $0xf0] sm:$0xff] %v552_v12  ;;  %v553_v22 = vadd.f32 0.5, %v489_v13  ;;  %v491_v23 = vmul.f32 0.5, %v939_v16  ;;  %v372_v24 = vmul.f32 0.5, %v790_v15  ;;  %v192_v6 = vld [vmem:[%s1224_s30 + $0x1b0] sm:$0xff] }
  0x76   : > { %954 = vtanh.f32 %v371_v14  ;;  %v943_v27 = vpop.eup %942  ;;  %v554_v28 = vadd.f32 0.5, %v490_v17  ;;  %v492_v29 = vmul.f32 0.5, %v941_v21  ;;  %v373_v30 = vmul.f32 0.5, %v791_v18 }
  0x77   : > { %v374_v31 = vmul.f32 0.5, %v792_v19  ;;  %617 = vst [vmem:[%s1254_s17 + $0xf8] sm:$0xff] %v553_v22  ;;  %v555_v32 = vadd.f32 0.5, %v491_v23  ;;  %v493_v33 = vmul.f32 0.5, %v943_v27  ;;  %956 = vtanh.f32 %v372_v24 }
  0x78   : > { %v793_v34 = vadd.f32 -25.0, %v247_v20  ;;  %v945_v36 = vpop.eup %944  ;;  %618 = vst [vmem:[%s1254_s17 + $0x100] sm:$0xff] %v554_v28  ;;  %v556_v37 = vadd.f32 0.5, %v492_v29  ;;  %958 = vtanh.f32 %v373_v30  ;;  %v248_v38 = vmul.f32 50.0, %v184_v25 }
  0x79   : > { %v249_v39 = vmul.f32 50.0, %v185_v26  ;;  %v947_v41 = vpop.eup %946  ;;  %619 = vst [vmem:[%s1254_s17 + $0x108] sm:$0xff] %v555_v32  ;;  %v557_v42 = vadd.f32 0.5, %v493_v33  ;;  %v494_v43 = vmul.f32 0.5, %v945_v36  ;;  %960 = vtanh.f32 %v374_v31  ;;  %v194_v32 = vld [vmem:[%s1224_s30 + $0x1c0] sm:$0xff]  ;;  %v195_v33 = vld [vmem:[%s1224_s30 + $0x1c8] sm:$0xff] }
  0x7a   : > { %v375_v44 = vmul.f32 0.5, %v793_v34  ;;  %v949_v45 = vpop.eup %948  ;;  %620 = vst [vmem:[%s1254_s17 + $0x110] sm:$0xff] %v556_v37  ;;  %v495_v46 = vmul.f32 0.5, %v947_v41  ;;  %v794_v47 = vadd.f32 -25.0, %v248_v38  ;;  %v250_v49 = vmul.f32 50.0, %v186_v35  ;;  %v196_v34 = vld [vmem:[%s1224_s30 + $0x1d0] sm:$0xff] }
  0x7b   : > { %v795_v48 = vadd.f32 -25.0, %v249_v39  ;;  %v951_v50 = vpop.eup %950  ;;  %621 = vst [vmem:[%s1254_s17 + $0x118] sm:$0xff] %v557_v42  ;;  %v558_v51 = vadd.f32 0.5, %v494_v43  ;;  %v496_v52 = vmul.f32 0.5, %v949_v45  ;;  %v251_v53 = vmul.f32 50.0, %v187_v40  ;;  %v197_v39 = vld [vmem:[%s1224_s30 + $0x1d8] sm:$0xff] }
  0x7c   : > { %962 = vtanh.f32 %v375_v44  ;;  %v559_v57 = vadd.f32 0.5, %v495_v46  ;;  %v497_v58 = vmul.f32 0.5, %v951_v50  ;;  %v376_v59 = vmul.f32 0.5, %v794_v47 }
  0x7d   : > { %v953_v56 = vpop.eup %952  ;;  %v377_v60 = vmul.f32 0.5, %v795_v48  ;;  %622 = vst [vmem:[%s1254_s17 + $0x120] sm:$0xff] %v558_v51  ;;  %v560_v61 = vadd.f32 0.5, %v496_v52  ;;  %v796_v63 = vadd.f32 -25.0, %v250_v49  ;;  %v797_v0 = vadd.f32 -25.0, %v251_v53  ;;  %v198_v51 = vld [vmem:[%s1224_s30 + $0x1e0] sm:$0xff] }
  0x7e   : > { %v498_v62 = vmul.f32 0.5, %v953_v56  ;;  %623 = vst [vmem:[%s1254_s17 + $0x128] sm:$0xff] %v559_v57  ;;  %v561_v2 = vadd.f32 0.5, %v497_v58  ;;  %964 = vtanh.f32 %v376_v59  ;;  %v252_v3 = vmul.f32 50.0, %v188_v54  ;;  %v199_v59 = vld [vmem:[%s1224_s30 + $0x1e8] sm:$0xff] }
  0x7f   : > { %v253_v4 = vmul.f32 50.0, %v189_v55  ;;  %624 = vst [vmem:[%s1254_s17 + $0x130] sm:$0xff] %v560_v61  ;;  %966 = vtanh.f32 %v377_v60  ;;  %v378_v10 = vmul.f32 0.5, %v796_v63  ;;  %v379_v11 = vmul.f32 0.5, %v797_v0 }
  0x80   : > { %v955_v8 = vpop.eup %954  ;;  %v562_v9 = vadd.f32 0.5, %v498_v62  ;;  %625 = vst [vmem:[%s1254_s17 + $0x138] sm:$0xff] %v561_v2  ;;  %v798_v13 = vadd.f32 -25.0, %v252_v3  ;;  %v254_v15 = vmul.f32 50.0, %v190_v1  ;;  %v255_v17 = vmul.f32 50.0, %v191_v5  ;;  %v200_v1 = vld [vmem:[%s1224_s30 + $0x1f0] sm:$0xff] }
  0x81   : > { %v499_v12 = vmul.f32 0.5, %v955_v8  ;;  %v799_v14 = vadd.f32 -25.0, %v253_v4  ;;  %v957_v16 = vpop.eup %956  ;;  %968 = vtanh.f32 %v378_v10  ;;  %v256_v18 = vmul.f32 50.0, %v192_v6  ;;  %v201_v2 = vld [vmem:[%s1224_s30 + $0x1f8] sm:$0xff] }
  0x82   : > { %626 = vst [vmem:[%s1254_s17 + $0x140] sm:$0xff] %v562_v9  ;;  %v257_v19 = vmul.f32 50.0, %v193_v7  ;;  %v959_v20 = vpop.eup %958  ;;  %v500_v22 = vmul.f32 0.5, %v957_v16  ;;  %970 = vtanh.f32 %v379_v11  ;;  %v380_v23 = vmul.f32 0.5, %v798_v13 }
  0x83   : > { %v563_v21 = vadd.f32 0.5, %v499_v12  ;;  %v961_v24 = vpop.eup %960  ;;  %v501_v25 = vmul.f32 0.5, %v959_v20  ;;  %v381_v26 = vmul.f32 0.5, %v799_v14  ;;  %v800_v27 = vadd.f32 -25.0, %v254_v15 }
  0x84   : > { %v801_v28 = vadd.f32 -25.0, %v255_v17  ;;  %v564_v29 = vadd.f32 0.5, %v500_v22  ;;  %v502_v30 = vmul.f32 0.5, %v961_v24  ;;  %972 = vtanh.f32 %v380_v23 }
  0x85   : > { %627 = vst [vmem:[%s1254_s17 + $0x148] sm:$0xff] %v563_v21  ;;  %v802_v31 = vadd.f32 -25.0, %v256_v18  ;;  %v565_v36 = vadd.f32 0.5, %v501_v25  ;;  %974 = vtanh.f32 %v381_v26  ;;  %v382_v37 = vmul.f32 0.5, %v800_v27 }
  0x86   : > { %v963_v35 = vpop.eup %962  ;;  %v383_v38 = vmul.f32 0.5, %v801_v28  ;;  %628 = vst [vmem:[%s1254_s17 + $0x150] sm:$0xff] %v564_v29  ;;  %v566_v40 = vadd.f32 0.5, %v502_v30  ;;  %v803_v43 = vadd.f32 -25.0, %v257_v19  ;;  %v258_v44 = vmul.f32 50.0, %v194_v32 }
  0x87   : > { %v503_v41 = vmul.f32 0.5, %v963_v35  ;;  %v384_v42 = vmul.f32 0.5, %v802_v31  ;;  %629 = vst [vmem:[%s1254_s17 + $0x158] sm:$0xff] %v565_v36  ;;  %976 = vtanh.f32 %v382_v37  ;;  %v259_v45 = vmul.f32 50.0, %v195_v33 }
  0x88   : > { %v260_v46 = vmul.f32 50.0, %v196_v34  ;;  %v965_v47 = vpop.eup %964  ;;  %630 = vst [vmem:[%s1254_s17 + $0x160] sm:$0xff] %v566_v40  ;;  %978 = vtanh.f32 %v383_v38  ;;  %v385_v49 = vmul.f32 0.5, %v803_v43  ;;  %v261_v50 = vmul.f32 50.0, %v197_v39 }
  0x89   : > { %v567_v48 = vadd.f32 0.5, %v503_v41  ;;  %v967_v52 = vpop.eup %966  ;;  %v504_v53 = vmul.f32 0.5, %v965_v47  ;;  %980 = vtanh.f32 %v384_v42  ;;  %v804_v54 = vadd.f32 -25.0, %v258_v44 }
  0x8a   : > { %v805_v55 = vadd.f32 -25.0, %v259_v45  ;;  %v505_v56 = vmul.f32 0.5, %v967_v52  ;;  %982 = vtanh.f32 %v385_v49  ;;  %v806_v57 = vadd.f32 -25.0, %v260_v46 }
  0x8b   : > { %631 = vst [vmem:[%s1254_s17 + $0x168] sm:$0xff] %v567_v48  ;;  %v807_v58 = vadd.f32 -25.0, %v261_v50  ;;  %v969_v60 = vpop.eup %968  ;;  %v568_v61 = vadd.f32 0.5, %v504_v53  ;;  %v386_v62 = vmul.f32 0.5, %v804_v54  ;;  %v262_v0 = vmul.f32 50.0, %v198_v51 }
  0x8c   : > { %v387_v63 = vmul.f32 0.5, %v805_v55  ;;  %v971_v3 = vpop.eup %970  ;;  %v569_v4 = vadd.f32 0.5, %v505_v56  ;;  %v506_v5 = vmul.f32 0.5, %v969_v60  ;;  %v388_v6 = vmul.f32 0.5, %v806_v57 }
  0x8d   : > { %v389_v7 = vmul.f32 0.5, %v807_v58  ;;  %632 = vst [vmem:[%s1254_s17 + $0x170] sm:$0xff] %v568_v61  ;;  %v507_v8 = vmul.f32 0.5, %v971_v3  ;;  %984 = vtanh.f32 %v386_v62  ;;  %v808_v9 = vadd.f32 -25.0, %v262_v0 }
  0x8e   : > { %v263_v10 = vmul.f32 50.0, %v199_v59  ;;  %v973_v11 = vpop.eup %972  ;;  %633 = vst [vmem:[%s1254_s17 + $0x178] sm:$0xff] %v569_v4  ;;  %v570_v12 = vadd.f32 0.5, %v506_v5  ;;  %986 = vtanh.f32 %v387_v63  ;;  %v264_v13 = vmul.f32 50.0, %v200_v1 }
  0x8f   : > { %v265_v14 = vmul.f32 50.0, %v201_v2  ;;  %v975_v15 = vpop.eup %974  ;;  %v571_v16 = vadd.f32 0.5, %v507_v8  ;;  %v508_v17 = vmul.f32 0.5, %v973_v11  ;;  %988 = vtanh.f32 %v388_v6 }
  0x90   : > { %v390_v18 = vmul.f32 0.5, %v808_v9  ;;  %634 = vst [vmem:[%s1254_s17 + $0x180] sm:$0xff] %v570_v12  ;;  %v509_v19 = vmul.f32 0.5, %v975_v15  ;;  %990 = vtanh.f32 %v389_v7  ;;  %v809_v20 = vadd.f32 -25.0, %v263_v10 }
  0x91   : > { %v810_v21 = vadd.f32 -25.0, %v264_v13  ;;  %v977_v22 = vpop.eup %976  ;;  %635 = vst [vmem:[%s1254_s17 + $0x188] sm:$0xff] %v571_v16  ;;  %v572_v23 = vadd.f32 0.5, %v508_v17  ;;  %v811_v24 = vadd.f32 -25.0, %v265_v14 }
  0x92   : > { %992 = vtanh.f32 %v390_v18  ;;  %v979_v25 = vpop.eup %978  ;;  %v573_v26 = vadd.f32 0.5, %v509_v19  ;;  %v510_v27 = vmul.f32 0.5, %v977_v22  ;;  %v391_v28 = vmul.f32 0.5, %v809_v20 }
  0x93   : > { %v392_v29 = vmul.f32 0.5, %v810_v21  ;;  %v981_v30 = vpop.eup %980  ;;  %636 = vst [vmem:[%s1254_s17 + $0x190] sm:$0xff] %v572_v23  ;;  %v511_v31 = vmul.f32 0.5, %v979_v25  ;;  %v393_v32 = vmul.f32 0.5, %v811_v24 }
  0x94   : > { %v983_v33 = vpop.eup %982  ;;  %637 = vst [vmem:[%s1254_s17 + $0x198] sm:$0xff] %v573_v26  ;;  %v574_v34 = vadd.f32 0.5, %v510_v27  ;;  %v512_v35 = vmul.f32 0.5, %v981_v30  ;;  %994 = vtanh.f32 %v391_v28 }
  0x95   : > { %v575_v36 = vadd.f32 0.5, %v511_v31  ;;  %v513_v37 = vmul.f32 0.5, %v983_v33  ;;  %996 = vtanh.f32 %v392_v29 }
  0x96   : > { %638 = vst [vmem:[%s1254_s17 + $0x1a0] sm:$0xff] %v574_v34  ;;  %v576_v38 = vadd.f32 0.5, %v512_v35  ;;  %998 = vtanh.f32 %v393_v32 }
  0x97   : > { %v985_v39 = vpop.eup %984  ;;  %639 = vst [vmem:[%s1254_s17 + $0x1a8] sm:$0xff] %v575_v36  ;;  %v577_v40 = vadd.f32 0.5, %v513_v37 }
  0x98   : > { %v987_v41 = vpop.eup %986  ;;  %640 = vst [vmem:[%s1254_s17 + $0x1b0] sm:$0xff] %v576_v38  ;;  %v514_v42 = vmul.f32 0.5, %v985_v39 }
  0x99   : > { %v989_v43 = vpop.eup %988  ;;  %641 = vst [vmem:[%s1254_s17 + $0x1b8] sm:$0xff] %v577_v40  ;;  %v515_v44 = vmul.f32 0.5, %v987_v41 }
  0x9a   : > { %v991_v45 = vpop.eup %990  ;;  %v578_v46 = vadd.f32 0.5, %v514_v42  ;;  %v516_v47 = vmul.f32 0.5, %v989_v43 }
  0x9b   : > { %v579_v49 = vadd.f32 0.5, %v515_v44  ;;  %v517_v50 = vmul.f32 0.5, %v991_v45 }
  0x9c   : > { %v993_v48 = vpop.eup %992  ;;  %642 = vst [vmem:[%s1254_s17 + $0x1c0] sm:$0xff] %v578_v46  ;;  %v580_v51 = vadd.f32 0.5, %v516_v47 }
  0x9d   : > { %v518_v52 = vmul.f32 0.5, %v993_v48  ;;  %643 = vst [vmem:[%s1254_s17 + $0x1c8] sm:$0xff] %v579_v49  ;;  %v581_v53 = vadd.f32 0.5, %v517_v50 }
  0x9e   : > { %v995_v54 = vpop.eup %994  ;;  %644 = vst [vmem:[%s1254_s17 + $0x1d0] sm:$0xff] %v580_v51 }
  0x9f   : > { %v582_v55 = vadd.f32 0.5, %v518_v52  ;;  %v997_v56 = vpop.eup %996  ;;  %645 = vst [vmem:[%s1254_s17 + $0x1d8] sm:$0xff] %v581_v53  ;;  %v519_v57 = vmul.f32 0.5, %v995_v54 }
  0xa0   : > { %v999_v58 = vpop.eup %998  ;;  %v520_v59 = vmul.f32 0.5, %v997_v56 }
  0xa1   : > { %646 = vst [vmem:[%s1254_s17 + $0x1e0] sm:$0xff] %v582_v55  ;;  %v583_v60 = vadd.f32 0.5, %v519_v57  ;;  %v521_v61 = vmul.f32 0.5, %v999_v58 }
  0xa2   : > { %v584_v62 = vadd.f32 0.5, %v520_v59 }
  0xa3   : > { %647 = vst [vmem:[%s1254_s17 + $0x1e8] sm:$0xff] %v583_v60  ;;  %v585_v63 = vadd.f32 0.5, %v521_v61 }
  0xa4   : > { %648 = vst [vmem:[%s1254_s17 + $0x1f0] sm:$0xff] %v584_v62 }
  0xa5   : > { %649 = vst [vmem:[%s1254_s17 + $0x1f8] sm:$0xff] %v585_v63 }
  0xa6   : > { %1043 = shalt.err (!%p1040_p2)
}
  0xa7   : > { %s1044_s13 = scalar_lea.hbm %s1364_s2, 8192  ;;  %s1048_s20 = scalar_lea.hbm %s1414_s1, 16384 }
  0xa8   : > { %p1045_p4 = scmp.ne.s32.totalorder %s1364_s2, %s1044_s13  ;;  %p1049_p9 = scmp.lt.u32.totalorder %s1364_s2, %s1414_s1 }
  0xa9   : > { %p1050_p1 = scmp.lt.u32.totalorder %s1048_s20, %s1044_s13  ;;  %p1052_p6 = scmp.lt.u32.totalorder %s1044_s13, %s1364_s2 }
  0xaa   : > { %p1046_p5 = pnand %p1045_p4, %p1421_p11 }
  0xab   : > { %p1051_p3 = por %p1050_p1, %p1049_p9 }
  0xac   : > { %p1047_p7 = pneg %p1046_p5 }
  0xad   : > { %p1053_p12 = por %p1052_p6, %p1051_p3 }
  0xaf   : > { %p1054_p13 = pnand %p1053_p12, %p1047_p7 }
  0xb1   : > { %1057 = shalt.err (!%p1054_p13)
}
  0xb2   : > { %s1102_s24 = smov 2048   ;;  %s1103_s26 = smov 128  }
  0xb3   : > { %824 = dma.vmem_to_hbm [thread:$0]  (%p1421_p11), %s1366_s27, 8192, %s1364_s2, %s651_s10, %s1102_s24, %s1102_s24, %s1103_s26  }
  0xb4 PF: > { %s680_s30 = sand.u32 1, %s1084_s6   ;;  %p1422_p8 = scmp.ne.s32.totalorder %s1419_s19, 0 }
  0xb5   : > { %p1423_p10 = scmp.ge.s32.totalorder %s1096_s9, 2  ;;  %s681_s17 = scalar_lea.sflag [#allocation4], %s680_s30 }
  0xb7   : > { %p831_p0 = pnand %p1423_p10, %p1422_p8 }
  0xb9   : > { %1079 = dma.done.wait (!%p831_p0), %s681_s17, 8192  }
  0xba   : > { %1081 = vsyncadd (!%p831_p0), %s681_s17, 4294959104  ;;  %p14_p2 = scmp.ge.s32.totalorder %s1139_s12, 4   ;;  %s1424_s6 = smov %s1088_s7 }
  0xbb   : > { %s1425_s7 = smov %s1092_s8  ;;  %s1426_s8 = smov %s1151_s15 }
  0xbc   : > { %s1427_s9 = smov %s1139_s12  ;;  %16 = sbr.rel (!%p14_p2) target bundleno = 5 (0x5), region = 69 }
  0xc3   :  { %686 = vsyncpa [#allocation3], 1 }
  0xc4   :  { %688 = vsyncpa [#allocation3 + $0x1], 1 }
  0xc5   :  { %689 = vsyncpa [#allocation4], 1 }
  0xc6   :  { %691 = vsyncpa [#allocation4 + $0x1], 1 }

</bundles_post_ra>
